<compile_context>
chip_gen: v7x
topology: tpu7x:2x2x1
jax: 0.10.0
libtpu: 0.0.40
codegen_flags: <defaults>
</compile_context>

<pallas_src>
import math

import jax
import jax.numpy as jnp
from jax.experimental import pallas as pl
from jax.experimental.pallas import tpu as pltpu


def _round_up(x: int, m: int) -> int:
    return ((x + m - 1) // m) * m


def _gcn_kernel(x_ref, adj_ref, w_ref, b_ref, out_ref, support_ref):
    """One grid step: out[i-tile] += adj[i-tile, k-tile] @ support[k-tile]."""
    i = pl.program_id(0)        # output-row tile index
    k = pl.program_id(1)        # contraction tile index (adj cols / x rows)
    nk = pl.num_programs(1)
    tk = adj_ref.shape[1]       # static contraction tile size

    # ---- one-time: support = x @ W into persistent bf16 VMEM scratch -------
    # Runs only at the very first grid step; the row axis is sequential
    # ("arbitrary"), so every later step sees the filled scratch.
    @pl.when(jnp.logical_and(i == 0, k == 0))
    def _():
        support_ref[...] = jnp.dot(
            x_ref[...].astype(jnp.bfloat16),
            w_ref[...].astype(jnp.bfloat16),
            preferred_element_type=jnp.float32,
        ).astype(jnp.bfloat16)

    # ---- accumulator init on the first contraction step ---------------------
    @pl.when(k == 0)
    def _():
        out_ref[...] = jnp.zeros_like(out_ref)

    # ---- adj_tile (TM, TK) @ support slice (TK, OUT_P), f32 accumulation ----
    start = pl.multiple_of(k * tk, tk)
    sup = support_ref[pl.ds(start, tk), :]          # already bf16
    out_ref[...] += jnp.dot(
        adj_ref[...].astype(jnp.bfloat16),
        sup,
        preferred_element_type=jnp.float32,
    )

    # ---- epilogue: bias add on the last contraction step ---------------------
    @pl.when(k == nk - 1)
    def _():
        out_ref[...] += b_ref[...]                  # f32 broadcast over rows


def graph_convolution(x, adj, weight, bias=None, *, tm=256, tk=512):
    """Pallas TPU implementation of GraphConvolution.forward.

    x      : (N, in_features)   adj : (N, N)
    weight : (in_features, out_features)
    bias   : (out_features,) or None
    returns (N, out_features) float32
    """
    x = jnp.asarray(x, jnp.float32)
    adj = jnp.asarray(adj, jnp.float32)
    weight = jnp.asarray(weight, jnp.float32)

    n, in_f = x.shape
    in_f_w, out_f = weight.shape
    assert in_f == in_f_w
    assert adj.shape == (n, n)

    # Lane-dense output feature dim.
    out_f_p = _round_up(out_f, 128)

    # Tile sizes, respecting the (8, 128) block constraint of adj / out tiles.
    tm = min(tm, _round_up(n, 8))
    tk = min(tk, _round_up(n, 128))
    n_m = _round_up(n, tm)      # padded rows of adj / out
    n_k = _round_up(n, tk)      # padded contraction dim (adj cols == x rows)

    # Zero-pad so every block divides evenly (zeros are exact in the matmul).
    x_p = jnp.pad(x, ((0, n_k - n), (0, 0)))
    adj_p = jnp.pad(adj, ((0, n_m - n), (0, n_k - n)))
    w_p = jnp.pad(weight, ((0, 0), (0, out_f_p - out_f)))
    if bias is None:
        b_p = jnp.zeros((1, out_f_p), jnp.float32)
    else:
        b_p = jnp.pad(
            jnp.asarray(bias, jnp.float32).reshape(1, out_f),
            ((0, 0), (0, out_f_p - out_f)),
        )

    grid = (n_m // tm, n_k // tk)

    flops = 2 * n_k * in_f * out_f_p + 2 * n_m * n_k * out_f_p
    bytes_accessed = 4 * (
        x_p.size + adj_p.size + w_p.size + b_p.size + n_m * out_f_p
    )

    out_p = pl.pallas_call(
        _gcn_kernel,
        out_shape=jax.ShapeDtypeStruct((n_m, out_f_p), jnp.float32),
        grid_spec=pltpu.PrefetchScalarGridSpec(
            num_scalar_prefetch=0,
            grid=grid,
            in_specs=[
                # x, W, bias are small and never change block index -> DMA'd once.
                pl.BlockSpec((n_k, in_f), lambda i, k: (0, 0)),       # x (full)
                pl.BlockSpec((tm, tk), lambda i, k: (i, k)),          # adj tile
                pl.BlockSpec((in_f, out_f_p), lambda i, k: (0, 0)),   # W (full)
                pl.BlockSpec((1, out_f_p), lambda i, k: (0, 0)),      # bias
            ],
            out_specs=pl.BlockSpec((tm, out_f_p), lambda i, k: (i, 0)),
            scratch_shapes=[
                pltpu.VMEM((n_k, out_f_p), jnp.bfloat16),  # persistent support
            ],
        ),
        compiler_params=pltpu.CompilerParams(
            # Row axis must stay sequential: the support scratch is written only
            # at grid step (0, 0) and reused afterwards.
            dimension_semantics=("arbitrary", "arbitrary"),
        ),
        cost_estimate=pl.CostEstimate(
            flops=flops, transcendentals=0, bytes_accessed=bytes_accessed
        ),
    )(x_p, adj_p, w_p, b_p)

    # Strip the row / feature padding.
    return out_p[:n, :out_f]


if __name__ == "__main__":
    # Small shapes consistent with the module: N nodes, in/out feature dims.
    N, IN_F, OUT_F = 64, 32, 16

    key = jax.random.PRNGKey(0)
    k_x, k_adj, k_w, k_b = jax.random.split(key, 4)

    # Inputs
    x = jax.random.normal(k_x, (N, IN_F), dtype=jnp.float32)
    # Row-normalized random adjacency (typical GCN input).
    adj_raw = jax.random.uniform(k_adj, (N, N), dtype=jnp.float32)
    adj = adj_raw / jnp.sum(adj_raw, axis=1, keepdims=True)

    # Parameters initialized exactly like the PyTorch module:
    # uniform(-stdv, stdv) with stdv = 1/sqrt(out_features).
    stdv = 1.0 / math.sqrt(OUT_F)
    weight = jax.random.uniform(
        k_w, (IN_F, OUT_F), dtype=jnp.float32, minval=-stdv, maxval=stdv
    )
    bias = jax.random.uniform(
        k_b, (OUT_F,), dtype=jnp.float32, minval=-stdv, maxval=stdv
    )

    out = graph_convolution(x, adj, weight, bias)
    out = jax.block_until_ready(out)

    # Correctness check against the plain-JAX f32 reference of the PyTorch
    # forward. The kernel uses bf16 MXU inputs with f32 accumulation, so we use
    # a correspondingly looser tolerance.
    ref = adj @ (x @ weight) + bias
    assert out.shape == (N, OUT_F)
    assert jnp.allclose(out, ref, atol=2e-2, rtol=2e-2)

    print("KERNEL_OK")
</pallas_src>

<mosaic_0001>
module attributes {stable_mosaic.version = 11 : i64} {
  func.func @_gcn_kernel(%arg0: i32, %arg1: i32, %arg2: memref<128x32xf32, #tpu.memory_space<vmem>>, %arg3: memref<64x128xf32, #tpu.memory_space<vmem>>, %arg4: memref<32x128xf32, #tpu.memory_space<vmem>>, %arg5: memref<1x128xf32, #tpu.memory_space<vmem>>, %arg6: memref<64x128xf32, #tpu.memory_space<vmem>>, %arg7: memref<128x128xbf16, #tpu.memory_space<vmem>>) attributes {dimension_semantics = [#tpu.dimension_semantics<arbitrary>, #tpu.dimension_semantics<arbitrary>], iteration_bounds = array<i64: 1, 1>, scalar_prefetch = 0 : i64, scratch_operands = 1 : i64, tpu.core_type = #tpu.core_type<tc>, window_params = [{pipeline_mode = #tpu.pipeline_mode<synchronous>, transform_indices = @transform_0, window_bounds = array<i64: 128, 32>}, {transform_indices = @transform_1, window_bounds = array<i64: 64, 128>}, {pipeline_mode = #tpu.pipeline_mode<synchronous>, transform_indices = @transform_2, window_bounds = array<i64: 32, 128>}, {pipeline_mode = #tpu.pipeline_mode<synchronous>, transform_indices = @transform_3, window_bounds = array<i64: 1, 128>}, {transform_indices = @transform_4, window_bounds = array<i64: 64, 128>}]} {
    %c0_i32 = arith.constant 0 : i32
    %0 = arith.cmpi eq, %arg0, %c0_i32 : i32
    %c0_i32_0 = arith.constant 0 : i32
    %1 = arith.cmpi eq, %arg1, %c0_i32_0 : i32
    %2 = arith.andi %0, %1 : i1
    %3 = arith.extui %2 : i1 to i32
    %c0_i32_1 = arith.constant 0 : i32
    %4 = arith.cmpi ne, %3, %c0_i32_1 : i32
    scf.if %4 {
      %c0_12 = arith.constant 0 : index
      %c0_13 = arith.constant 0 : index
      %21 = vector.load %arg2[%c0_12, %c0_13] : memref<128x32xf32, #tpu.memory_space<vmem>>, vector<128x32xf32>
      %22 = arith.truncf %21 : vector<128x32xf32> to vector<128x32xbf16>
      %c0_14 = arith.constant 0 : index
      %c0_15 = arith.constant 0 : index
      %23 = vector.load %arg4[%c0_14, %c0_15] : memref<32x128xf32, #tpu.memory_space<vmem>>, vector<32x128xf32>
      %24 = arith.truncf %23 : vector<32x128xf32> to vector<32x128xbf16>
      %cst_16 = arith.constant dense<0.000000e+00> : vector<128x128xf32>
      %25 = tpu.matmul %22, %24, %cst_16 {dimension_numbers = #tpu.dot_dimension_numbers<[1], [0], [0], [1], [0, 0, 1, 1], [], []>} : vector<128x32xbf16>, vector<32x128xbf16>, vector<128x128xf32> -> vector<128x128xf32>
      %26 = arith.truncf %25 : vector<128x128xf32> to vector<128x128xbf16>
      %c0_17 = arith.constant 0 : index
      %c0_18 = arith.constant 0 : index
      %27 = vector.load %arg7[%c0_17, %c0_18] : memref<128x128xbf16, #tpu.memory_space<vmem>>, vector<128x128xbf16>
      tpu.vector_store %arg7[%c0_17, %c0_18], %26 {strides = array<i32>} : memref<128x128xbf16, #tpu.memory_space<vmem>>, vector<128x128xbf16>,
    } else {
    }
    %c0_i32_2 = arith.constant 0 : i32
    %5 = arith.cmpi eq, %arg1, %c0_i32_2 : i32
    %6 = arith.extui %5 : i1 to i32
    %c0_i32_3 = arith.constant 0 : i32
    %7 = arith.cmpi ne, %6, %c0_i32_3 : i32
    scf.if %7 {
      %cst_12 = arith.constant 0.000000e+00 : f32
      %21 = vector.broadcast %cst_12 : f32 to vector<64x128xf32>
      %c0_13 = arith.constant 0 : index
      %c0_14 = arith.constant 0 : index
      %22 = vector.load %arg6[%c0_13, %c0_14] : memref<64x128xf32, #tpu.memory_space<vmem>>, vector<64x128xf32>
      tpu.vector_store %arg6[%c0_13, %c0_14], %21 {strides = array<i32>} : memref<64x128xf32, #tpu.memory_space<vmem>>, vector<64x128xf32>,
    } else {
    }
    %c128_i32 = arith.constant 128 : i32
    %8 = arith.muli %arg1, %c128_i32 : i32
    %9 = tpu.assume_multiple %8, 128 : i32
    %10 = arith.index_cast %9 : i32 to index
    %c0 = arith.constant 0 : index
    %11 = vector.load %arg7[%10, %c0] : memref<128x128xbf16, #tpu.memory_space<vmem>>, vector<128x128xbf16>
    %c0_4 = arith.constant 0 : index
    %c0_5 = arith.constant 0 : index
    %12 = vector.load %arg6[%c0_4, %c0_5] : memref<64x128xf32, #tpu.memory_space<vmem>>, vector<64x128xf32>
    %c0_6 = arith.constant 0 : index
    %c0_7 = arith.constant 0 : index
    %13 = vector.load %arg3[%c0_6, %c0_7] : memref<64x128xf32, #tpu.memory_space<vmem>>, vector<64x128xf32>
    %14 = arith.truncf %13 : vector<64x128xf32> to vector<64x128xbf16>
    %cst = arith.constant dense<0.000000e+00> : vector<64x128xf32>
    %15 = tpu.matmul %14, %11, %cst {dimension_numbers = #tpu.dot_dimension_numbers<[1], [0], [0], [1], [0, 0, 1, 1], [], []>} : vector<64x128xbf16>, vector<128x128xbf16>, vector<64x128xf32> -> vector<64x128xf32>
    %16 = arith.addf %12, %15 : vector<64x128xf32>
    %c0_8 = arith.constant 0 : index
    %c0_9 = arith.constant 0 : index
    %17 = vector.load %arg6[%c0_8, %c0_9] : memref<64x128xf32, #tpu.memory_space<vmem>>, vector<64x128xf32>
    tpu.vector_store %arg6[%c0_8, %c0_9], %16 {strides = array<i32>} : memref<64x128xf32, #tpu.memory_space<vmem>>, vector<64x128xf32>,
    %c0_i32_10 = arith.constant 0 : i32
    %18 = arith.cmpi eq, %arg1, %c0_i32_10 : i32
    %19 = arith.extui %18 : i1 to i32
    %c0_i32_11 = arith.constant 0 : i32
    %20 = arith.cmpi ne, %19, %c0_i32_11 : i32
    scf.if %20 {
      %c0_12 = arith.constant 0 : index
      %c0_13 = arith.constant 0 : index
      %21 = vector.load %arg6[%c0_12, %c0_13] : memref<64x128xf32, #tpu.memory_space<vmem>>, vector<64x128xf32>
      %c0_14 = arith.constant 0 : index
      %c0_15 = arith.constant 0 : index
      %22 = vector.load %arg5[%c0_14, %c0_15] : memref<1x128xf32, #tpu.memory_space<vmem>>, vector<1x128xf32>
      %23 = vector.broadcast %22 : vector<1x128xf32> to vector<64x128xf32>
      %24 = arith.addf %21, %23 : vector<64x128xf32>
      %c0_16 = arith.constant 0 : index
      %c0_17 = arith.constant 0 : index
      %25 = vector.load %arg6[%c0_16, %c0_17] : memref<64x128xf32, #tpu.memory_space<vmem>>, vector<64x128xf32>
      tpu.vector_store %arg6[%c0_16, %c0_17], %24 {strides = array<i32>} : memref<64x128xf32, #tpu.memory_space<vmem>>, vector<64x128xf32>,
    } else {
    }
    return
  }
  func.func @transform_0(%arg0: i32, %arg1: i32) -> (i32, i32) {
    %c0_i32 = arith.constant 0 : i32
    %c0_i32_0 = arith.constant 0 : i32
    %c0_i32_1 = arith.constant 0 : i32
    return %c0_i32, %c0_i32_0 : i32, i32
  }
  func.func @transform_1(%arg0: i32, %arg1: i32) -> (i32, i32) {
    %c0_i32 = arith.constant 0 : i32
    return %arg0, %arg1 : i32, i32
  }
  func.func @transform_2(%arg0: i32, %arg1: i32) -> (i32, i32) {
    %c0_i32 = arith.constant 0 : i32
    %c0_i32_0 = arith.constant 0 : i32
    %c0_i32_1 = arith.constant 0 : i32
    return %c0_i32, %c0_i32_0 : i32, i32
  }
  func.func @transform_3(%arg0: i32, %arg1: i32) -> (i32, i32) {
    %c0_i32 = arith.constant 0 : i32
    %c0_i32_0 = arith.constant 0 : i32
    %c0_i32_1 = arith.constant 0 : i32
    return %c0_i32, %c0_i32_0 : i32, i32
  }
  func.func @transform_4(%arg0: i32, %arg1: i32) -> (i32, i32) {
    %c0_i32 = arith.constant 0 : i32
    %c0_i32_0 = arith.constant 0 : i32
    return %arg0, %c0_i32 : i32, i32
  }
}

</mosaic_0001>

<bundles_post_ra>
// kernel: tpu_custom_call.1
= control target key start
LH: loop header
LB: loop body
LE: loop exit
PB: predicated region body
PF: predicated region fallthrough
CT: control target
= control target key end

     0   :  { %vm55_vm0 = vcmask 261120   ;;  %s608_s0 = inlined_call_operand.vmem [shape: f32[128,32], index: 0, kind: input, shape index: {}]   ;;  %s609_s1 = inlined_call_operand.vmem [shape: f32[64,128], index: 1, kind: input, shape index: {}]   ;;  %s610_s2 = inlined_call_operand.vmem [shape: f32[32,128], index: 2, kind: input, shape index: {}]   ;;  %s611_s3 = inlined_call_operand.vmem [shape: f32[1,128], index: 3, kind: input, shape index: {}]   ;;  %s612_s4 = inlined_call_operand.hbm [shape: f32[64,128], index: 4, kind: output, shape index: {}]  }
   0x1   :  { %v49_v0 = vld [vmem:[%s610_s2] sm:$0xff]  ;;  %v50_v1 = vld [vmem:[%s610_s2 + $0x8] sm:$0xff]  ;;  %v51_v2 = vld [vmem:[%s610_s2 + $0x10] sm:$0xff] }
   0x2   :  { %v53_v3 = vpack.c.bf16 %v50_v1, %v49_v0  ;;  %v52_v4 = vld [vmem:[%s610_s2 + $0x18] sm:$0xff]  ;;  %v25_v5 = vld [vmem:[%s608_s0] sm:$0xff]  ;;  %v26_v6 = vld [vmem:[%s608_s0 + $0x8] sm:$0xff] }
   0x3   :  { %v54_v7 = vpack.c.bf16 %v52_v4, %v51_v2  ;;  %v41_v8 = vpack.c.bf16 %v26_v6, %v25_v5  ;;  %v27_v9 = vld [vmem:[%s608_s0 + $0x10] sm:$0xff]  ;;  %v28_v10 = vld [vmem:[%s608_s0 + $0x18] sm:$0xff]  ;;  %v29_v11 = vld [vmem:[%s608_s0 + $0x20] sm:$0xff] }
   0x4   :  { %401 = vmatprep.subr.bf16.mxu0 %v53_v3  ;;  %v30_v12 = vld [vmem:[%s608_s0 + $0x28] sm:$0xff] }
   0x5   :  { %402 = vmatpush3.bf16.msra.mxu0 %v53_v3  ;;  %405 = vmatprep.mubr.msk.bf16.mxu0 %vm55_vm0, %v41_v8 }
   0x6   :  { %403 = vmatprep.subr.bf16.mxu0 %v54_v7 }
   0x7   :  { %9 = vsyncpa [#allocation4], 0  ;;  %v42_v13 = vpack.c.bf16 %v28_v10, %v27_v9  ;;  %v43_v14 = vpack.c.bf16 %v30_v12, %v29_v11  ;;  %v31_v15 = vld [vmem:[%s608_s0 + $0x30] sm:$0xff]  ;;  %v32_v16 = vld [vmem:[%s608_s0 + $0x38] sm:$0xff] }
   0x8   :  { %v33_v17 = vld [vmem:[%s608_s0 + $0x40] sm:$0xff]  ;;  %v34_v18 = vld [vmem:[%s608_s0 + $0x48] sm:$0xff]  ;;  %v44_v19 = vpack.c.bf16 %v32_v16, %v31_v15  ;;  %v35_v21 = vld [vmem:[%s608_s0 + $0x50] sm:$0xff] }
   0x9   :  { %404 = vmatpush3.bf16.msra.mxu0 %v54_v7  ;;  %v45_v20 = vpack.c.bf16 %v34_v18, %v33_v17  ;;  %v36_v22 = vld [vmem:[%s608_s0 + $0x58] sm:$0xff]  ;;  %v37_v23 = vld [vmem:[%s608_s0 + $0x60] sm:$0xff]  ;;  %v38_v24 = vld [vmem:[%s608_s0 + $0x68] sm:$0xff] }
   0xa   :  { %v46_v25 = vpack.c.bf16 %v36_v22, %v35_v21  ;;  %v47_v26 = vpack.c.bf16 %v38_v24, %v37_v23  ;;  %v39_v27 = vld [vmem:[%s608_s0 + $0x70] sm:$0xff]  ;;  %v40_v28 = vld [vmem:[%s608_s0 + $0x78] sm:$0xff]  ;;  %v225_v30 = vld [vmem:[%s609_s1] sm:$0xff] }
   0xb   :  { %v48_v29 = vpack.c.bf16 %v40_v28, %v39_v27  ;;  %v226_v31 = vld [vmem:[%s609_s1 + $0x8] sm:$0xff]  ;;  %v227_v57 = vld [vmem:[%s609_s1 + $0x10] sm:$0xff]  ;;  %v228_v58 = vld [vmem:[%s609_s1 + $0x18] sm:$0xff] }
   0xc   :  { %406 = vmatmul.mubr.msk.bf16.vlgmr.msra.gmra.mrb[0].mxu0 %vm55_vm0, %v42_v13  ;;  %v233_v32 = vpack.c.bf16 %v226_v31, %v225_v30  ;;  %v229_v59 = vld [vmem:[%s609_s1 + $0x20] sm:$0xff]  ;;  %v230_v60 = vld [vmem:[%s609_s1 + $0x28] sm:$0xff]  ;;  %v234_v61 = vpack.c.bf16 %v228_v58, %v227_v57  ;;  %v231_v63 = vld [vmem:[%s609_s1 + $0x30] sm:$0xff] }
   0xd   :  { %409 = vmatprep.mubr.msk.bf16.mxu0 %vm55_vm0, %v43_v14  ;;  %v235_v62 = vpack.c.bf16 %v230_v60, %v229_v59  ;;  %v232_v0 = vld [vmem:[%s609_s1 + $0x38] sm:$0xff]  ;;  %v378_v3 = vld [vmem:[%s611_s3] ss:$0 sm:$0xff]  ;;  %s473_s1 = smov [#allocation3]  }
   0xe   :  { %437 = vmatprep.mubr.bf16.mxu1 %v233_v32  ;;  %v236_v1 = vpack.c.bf16 %v232_v0, %v231_v63  ;;  %s357_s18 = sshll.u32 %s473_s1, 4  ;;  %s358_s18 = int_to_ptr.vmem [resolvable:$true] %s357_s18 }
   0xf   :  { %s449_s3 = scalar_lea.vmem %s358_s18, 1024  ;;  %p454_p1 = scmp.lt.s32.totalorder %s358_s18, %s358_s18 }
  0x10   :  { %p450_p0 = scmp.ne.s32.totalorder %s358_s18, %s449_s3  ;;  %p455_p2 = scmp.lt.s32.totalorder %s449_s3, %s449_s3 }
  0x12   :  { %p456_p3 = por %p455_p2, %p454_p1 }
  0x14   :  { %410 = vmatmul.mubr.msk.bf16.gmra.mrb[4].mxu0 %vm55_vm0, %v44_v19  ;;  %p457_p4 = pnand %p456_p3, %p450_p0 }
  0x15   :  { %413 = vmatprep.mubr.msk.bf16.mxu0 %vm55_vm0, %v45_v20 }
  0x1c   :  { %414 = vmatmul.mubr.msk.bf16.gmra.mrb[8].mxu0 %vm55_vm0, %v46_v25 }
  0x1d   :  { %417 = vmatprep.mubr.msk.bf16.mxu0 %vm55_vm0, %v47_v26 }
  0x24   :  { %418 = vmatmul.mubr.msk.bf16.gmra.mrb[12].mxu0 %vm55_vm0, %v48_v29 }
  0xdf   :  { %v407_v33 = vpop.f32.mrb[0].mxu0 }
  0xe0   :  { %v114_v34 = vpop.f32.mrb[1].mxu0 }
  0xe1   :  { %v408_v35 = vpop.f32.mrb[2].mxu0 }
  0xe2   :  { %v178_v36 = vpack.c.bf16 %v408_v35, %v407_v33  ;;  %v117_v37 = vpop.f32.mrb[3].mxu0 }
  0xe3   :  { %v177_v38 = vpack.c.bf16 %v117_v37, %v114_v34 }
  0xe5   :  { %421 = vmatprep.subr.bf16.mxu1 %v177_v38 }
  0xe6   :  { %422 = vmatpush3.bf16.msra.mxu1 %v177_v38 }
  0xe7   :  { %v411_v39 = vpop.f32.mrb[4].mxu0  ;;  %423 = vmatprep.subr.bf16.mxu1 %v178_v36 }
  0xe8   :  { %v130_v40 = vpop.f32.mrb[5].mxu0 }
  0xe9   :  { %v412_v41 = vpop.f32.mrb[6].mxu0 }
  0xea   :  { %v180_v42 = vpack.c.bf16 %v412_v41, %v411_v39  ;;  %v133_v43 = vpop.f32.mrb[7].mxu0  ;;  %424 = vmatpush3.bf16.msra.mxu1 %v178_v36 }
  0xeb   :  { %v179_v44 = vpack.c.bf16 %v133_v43, %v130_v40 }
  0xed   :  { %425 = vmatprep.subr.bf16.mxu1 %v179_v44 }
  0xee   :  { %426 = vmatpush3.bf16.msra.mxu1 %v179_v44 }
  0xef   :  { %v415_v45 = vpop.f32.mrb[8].mxu0  ;;  %427 = vmatprep.subr.bf16.mxu1 %v180_v42 }
  0xf0   :  { %v146_v46 = vpop.f32.mrb[9].mxu0 }
  0xf1   :  { %v416_v47 = vpop.f32.mrb[10].mxu0 }
  0xf2   :  { %v182_v48 = vpack.c.bf16 %v416_v47, %v415_v45  ;;  %v149_v49 = vpop.f32.mrb[11].mxu0  ;;  %428 = vmatpush3.bf16.msra.mxu1 %v180_v42 }
  0xf3   :  { %v181_v50 = vpack.c.bf16 %v149_v49, %v146_v46 }
  0xf5   :  { %429 = vmatprep.subr.bf16.mxu1 %v181_v50 }
  0xf6   :  { %430 = vmatpush3.bf16.msra.mxu1 %v181_v50 }
  0xf7   :  { %v419_v51 = vpop.f32.mrb[12].mxu0  ;;  %431 = vmatprep.subr.bf16.mxu1 %v182_v48 }
  0xf8   :  { %v162_v52 = vpop.f32.mrb[13].mxu0 }
  0xf9   :  { %v420_v53 = vpop.f32.mrb[14].mxu0 }
  0xfa   :  { %v184_v54 = vpack.c.bf16 %v420_v53, %v419_v51  ;;  %v165_v55 = vpop.f32.mrb[15].mxu0  ;;  %432 = vmatpush3.bf16.msra.mxu1 %v182_v48 }
  0xfb   :  { %v183_v56 = vpack.c.bf16 %v165_v55, %v162_v52 }
  0xfd   :  { %433 = vmatprep.subr.bf16.mxu1 %v183_v56 }
  0xfe   :  { %434 = vmatpush3.bf16.msra.mxu1 %v183_v56 }
  0xff   :  { %435 = vmatprep.subr.bf16.mxu1 %v184_v54 }
 0x102   :  { %436 = vmatpush3.bf16.msra.mxu1 %v184_v54 }
 0x105   :  { %438 = vmatmul.mubr.bf16.vlgmr.msra.gmra.mrb[0].mxu1 %v234_v61 }
 0x106   :  { %441 = vmatprep.mubr.bf16.mxu1 %v235_v62 }
 0x10d   :  { %442 = vmatmul.mubr.bf16.gmra.mrb[4].mxu1 %v236_v1 }
 0x1d8   :  { %v439_v2 = vpop.f32.mrb[0].mxu1 }
 0x1d9   :  { %v271_v4 = vpop.f32.mrb[1].mxu1  ;;  %v338_v6 = vadd.f32 %v439_v2, %v378_v3 }
 0x1da   :  { %v440_v5 = vpop.f32.mrb[2].mxu1  ;;  %v336_v8 = vadd.f32 %v378_v3, %v271_v4 }
 0x1db   :  { %v274_v7 = vpop.f32.mrb[3].mxu1  ;;  %346 = vst [vmem:[#allocation3 + $0x10] sm:$0xff] %v338_v6  ;;  %v339_v9 = vadd.f32 %v440_v5, %v378_v3 }
 0x1dc   :  { %344 = vst [vmem:[#allocation3] sm:$0xff] %v336_v8  ;;  %v337_v10 = vadd.f32 %v378_v3, %v274_v7 }
 0x1dd   :  { %347 = vst [vmem:[#allocation3 + $0x18] sm:$0xff] %v339_v9 }
 0x1de   :  { %345 = vst [vmem:[#allocation3 + $0x8] sm:$0xff] %v337_v10 }
 0x1e0   :  { %v443_v11 = vpop.f32.mrb[4].mxu1 }
 0x1e1   :  { %v287_v12 = vpop.f32.mrb[5].mxu1  ;;  %v342_v14 = vadd.f32 %v443_v11, %v378_v3 }
 0x1e2   :  { %v444_v13 = vpop.f32.mrb[6].mxu1  ;;  %v340_v16 = vadd.f32 %v378_v3, %v287_v12 }
 0x1e3   :  { %v290_v15 = vpop.f32.mrb[7].mxu1  ;;  %350 = vst [vmem:[#allocation3 + $0x30] sm:$0xff] %v342_v14  ;;  %v343_v17 = vadd.f32 %v444_v13, %v378_v3 }
 0x1e4   :  { %348 = vst [vmem:[#allocation3 + $0x20] sm:$0xff] %v340_v16  ;;  %v341_v18 = vadd.f32 %v378_v3, %v290_v15 }
 0x1e5   :  { %351 = vst [vmem:[#allocation3 + $0x38] sm:$0xff] %v343_v17 }
 0x1e6   :  { %349 = vst [vmem:[#allocation3 + $0x28] sm:$0xff] %v341_v18 }
 0x1e7   :  { %460 = shalt.err (!%p457_p4)
}
 0x1e8   :  { %s461_s21 = scalar_lea.hbm %s612_s4, 1024 }
 0x1e9   :  { %p462_p5 = scmp.ne.s32.totalorder %s612_s4, %s461_s21  ;;  %p465_p6 = scmp.lt.u32.totalorder %s461_s21, %s612_s4 }
 0x1eb   :  { %p467_p7 = pnand %p465_p6, %p462_p5 }
 0x1ed   :  { %470 = shalt.err (!%p467_p7)
}
 0x1ee   :  { %s474_s26 = smov 128   ;;  %s475_s27 = smov 8  }
 0x1ef   :  { %363 = dma.vmem_to_hbm [thread:$0]  %s358_s18, 1024, %s612_s4, [#allocation4], %s474_s26, %s474_s26, %s475_s27  }
 0x1f0   :  { %471 = dma.done.wait [#allocation4], 1024  }
 0x1f1   :  { %472 = vsyncadd [#allocation4], 4294966272 }
 0x1f2   :  { %367 = vsyncpa [#allocation4], 1 }

</bundles_post_ra>
